<compile_context>
chip_gen: v5e
topology: v5e:2x2
jax: 0.10.0
libtpu: 0.0.40
codegen_flags: <defaults>
</compile_context>

<pallas_src>
import functools

import jax
import jax.numpy as jnp
from jax.experimental import pallas as pl
from jax.experimental.pallas import tpu as pltpu

_MiB = 1024 * 1024
_TILE_M = 256               # G output tile (matches the v6e/v7x 256x256 MXU)
_SINGLE_BLOCK_MAX_M = 256   # up to this M, keep one resident (M, M) block


def _round_up(x, m):
    return (x + m - 1) // m * m


def _vmem_budgets():
    """(vmem_limit_bytes, per-buffer feature-tile budget) for this chip."""
    try:
        cap = int(pltpu.get_tpu_info().vmem_capacity_bytes)
    except Exception:
        cap = 64 * _MiB                      # conservative (v7x-sized) fallback
    vmem_limit = min(cap * 3 // 4, 112 * _MiB)   # never request 100% of VMEM
    tile_budget = 5 * _MiB if cap <= 64 * _MiB else 14 * _MiB
    return vmem_limit, tile_budget


def _pick_tk(K, rows_per_operand, n_operands, itemsize, tile_budget,
             target_steps):
    """Largest 128-multiple K tile within the VMEM budget, capped so the K
    grid has >= target_steps steps whenever K is large enough (pipelining)."""
    bytes_per_col = rows_per_operand * itemsize * n_operands
    tk_budget = max(128, (tile_budget // bytes_per_col) // 128 * 128)
    tk_pipeline = max(128, (K // target_steps) // 128 * 128)
    return min(tk_budget, tk_pipeline, _round_up(K, 128))


# --------------------------------------------------------------------------
# Kernels: accumulate F_i @ F_j^T into a resident f32 output block over the
# innermost (reduction) grid axis.  Scale / target / MSE happen in the wrapper.
# --------------------------------------------------------------------------
def _gram_kernel_single(feat_ref, g_ref, *, k_valid, tk, mask_k):
    p = pl.program_id(0)            # parallel K-split slice (v7x dual-TC)
    k = pl.program_id(1)            # K reduction step within this slice

    @pl.when(k == 0)
    def _():
        g_ref[...] = jnp.zeros_like(g_ref)

    f = feat_ref[...]                                       # (M, tk)
    if mask_k:                      # static: K is not a multiple of tk
        g_idx = p * pl.num_programs(1) + k
        col = g_idx * tk + jax.lax.broadcasted_iota(jnp.int32, f.shape, 1)
        f = jnp.where(col < k_valid, f, jnp.zeros_like(f))

    # F @ F^T: contract the last dim of both operands.  This is the same form
    # as Q K^T in flash attention and lowers to the MXU with native-dtype
    # operands + f32 accumulation (no materialized transpose).
    g_ref[...] += jax.lax.dot_general(
        f, f, (((1,), (1,)), ((), ())), preferred_element_type=jnp.float32)


def _gram_kernel_tiled(ti_ref, tj_ref, a_ref, b_ref, g_ref, *,
                       k_valid, tk, mask_k):
    del ti_ref, tj_ref              # consumed only by the index_maps
    k = pl.program_id(1)

    @pl.when(k == 0)
    def _():
        g_ref[...] = jnp.zeros_like(g_ref)

    a = a_ref[...]                                          # (TM, tk) rows i
    b = b_ref[...]                                          # (TM, tk) rows j
    if mask_k:
        col = k * tk + jax.lax.broadcasted_iota(jnp.int32, a.shape, 1)
        valid = col < k_valid
        a = jnp.where(valid, a, jnp.zeros_like(a))
        b = jnp.where(valid, b, jnp.zeros_like(b))

    g_ref[...] += jax.lax.dot_general(
        a, b, (((1,), (1,)), ((), ())), preferred_element_type=jnp.float32)


# --------------------------------------------------------------------------
# Wrappers
# --------------------------------------------------------------------------
def _gram_single_block(feat, M, K):
    """Raw (unscaled) F F^T for small M: one resident (M, M) accumulator."""
    itemsize = jnp.dtype(feat.dtype).itemsize
    vmem_limit, tile_budget = _vmem_budgets()
    tk = _pick_tk(K, M, 1, itemsize, tile_budget, target_steps=8)
    n_tiles = pl.cdiv(K, tk)
    mask_k = (K % tk) != 0

    # Split the K reduction across a leading "parallel" axis so both v7x
    # TensorCores stream half the features each (two partial Gram matrices,
    # summed below).  On 1-TC chips this only costs one extra (M,M) writeback.
    P = 2 if (n_tiles >= 8 and n_tiles % 2 == 0) else 1
    n_k = n_tiles // P

    kernel = functools.partial(_gram_kernel_single,
                               k_valid=K, tk=tk, mask_k=mask_k)
    cost = pl.CostEstimate(
        flops=2 * M * M * n_tiles * tk,
        transcendentals=0,
        bytes_accessed=M * K * itemsize + P * M * M * 4)

    partial_g = pl.pallas_call(
        kernel,
        out_shape=jax.ShapeDtypeStruct((P, M, M), jnp.float32),
        grid_spec=pltpu.PrefetchScalarGridSpec(
            num_scalar_prefetch=0,
            grid=(P, n_k),
            in_specs=[pl.BlockSpec((M, tk), lambda p, k: (0, p * n_k + k))],
            out_specs=pl.BlockSpec((None, M, M), lambda p, k: (p, 0, 0)),
        ),
        compiler_params=pltpu.CompilerParams(
            dimension_semantics=("parallel", "arbitrary"),
            vmem_limit_bytes=vmem_limit),
        cost_estimate=cost,
    )(feat)
    return jnp.sum(partial_g, axis=0)


def _gram_tiled(feat, M, K):
    """Raw (unscaled) F F^T for large M: (TM, TM) lower-triangle output tiles."""
    itemsize = jnp.dtype(feat.dtype).itemsize
    vmem_limit, tile_budget = _vmem_budgets()
    tm = _TILE_M
    tk = _pick_tk(K, tm, 2, itemsize, tile_budget, target_steps=4)
    n_k = pl.cdiv(K, tk)
    mask_k = (K % tk) != 0

    # Lower-triangle tile list (Gram symmetry: j > i tiles are never computed).
    T = pl.cdiv(M, tm)
    ti_list, tj_list = [], []
    for i in range(T):
        for j in range(i + 1):
            ti_list.append(i)
            tj_list.append(j)
    n_tri = len(ti_list)
    ti = jnp.asarray(ti_list, dtype=jnp.int32)
    tj = jnp.asarray(tj_list, dtype=jnp.int32)

    kernel = functools.partial(_gram_kernel_tiled,
                               k_valid=K, tk=tk, mask_k=mask_k)
    cost = pl.CostEstimate(
        flops=2 * n_tri * tm * tm * n_k * tk,
        transcendentals=0,
        bytes_accessed=2 * n_tri * tm * n_k * tk * itemsize + M * M * 4)

    g_lower = pl.pallas_call(
        kernel,
        out_shape=jax.ShapeDtypeStruct((M, M), jnp.float32),
        grid_spec=pltpu.PrefetchScalarGridSpec(
            num_scalar_prefetch=2,                 # ti, tj tile tables (SMEM)
            grid=(n_tri, n_k),
            in_specs=[
                pl.BlockSpec((tm, tk), lambda t, k, ti, tj: (ti[t], k)),
                pl.BlockSpec((tm, tk), lambda t, k, ti, tj: (tj[t], k)),
            ],
            out_specs=pl.BlockSpec((tm, tm),
                                   lambda t, k, ti, tj: (ti[t], tj[t])),
        ),
        compiler_params=pltpu.CompilerParams(
            dimension_semantics=("parallel", "arbitrary"),
            vmem_limit_bytes=vmem_limit),
        cost_estimate=cost,
    )(ti, tj, feat, feat)

    # Mirror the computed lower triangle.  Upper-triangle tiles were skipped
    # and hold uninitialized data; jnp.tril select-masks them away NaN-safely.
    return jnp.tril(g_lower) + jnp.tril(g_lower, -1).T


def style_loss_forward(x, target, weight, *, feature_dtype=None):
    """Pallas StyleLoss.forward.  Returns (output, G, loss)."""
    a, b, c, d = x.shape
    M = a * b
    K = c * d

    feat = x.reshape(M, K)
    if feature_dtype is not None:
        # Optional reduced-precision feature streaming (e.g. jnp.bfloat16):
        # halves the kernel's HBM read and runs the MXU at its bf16 rate while
        # keeping f32 accumulation.  Opt-in (costs ~1e-2 relative accuracy).
        feat = feat.astype(feature_dtype)

    if M <= _SINGLE_BLOCK_MAX_M:
        g_raw = _gram_single_block(feat, M, K)
    else:
        g_raw = _gram_tiled(feat, M, K)

    # Scale + MSE epilogue in plain JAX: XLA fuses this tiny elementwise +
    # reduce essentially for free, and keeping it out of the kernel frees VMEM
    # and removes the serial last-step epilogue.
    scale = jnp.float32(weight) / jnp.float32(a * b * c * d)
    G = g_raw * scale
    loss = jnp.mean((G - target.astype(jnp.float32)) ** 2)

    output = x  # "clone": identity for immutable JAX arrays
    return output, G, loss


if __name__ == "__main__":
    key = jax.random.PRNGKey(0)
    kx, kt, kx2, kt2 = jax.random.split(key, 4)

    # ---- Test 1: module-sized shapes (single-block path, f32 features) ----
    a, b, c, d = 2, 4, 16, 16
    weight = 1000.0
    x = jax.random.normal(kx, (a, b, c, d), dtype=jnp.float32)

    # Deterministic synthetic target: Gram of a "style" image, pre-multiplied
    # by weight (mirrors `target.detach() * weight`).
    style = jax.random.normal(kt, (a, b, c, d), dtype=jnp.float32)
    sf = style.reshape(a * b, c * d)
    target = (sf @ sf.T) / float(a * b * c * d) * weight

    out, G, loss = style_loss_forward(x, target, weight)
    jax.block_until_ready((out, G, loss))

    f = x.reshape(a * b, c * d)
    G_ref = (f @ f.T) / float(a * b * c * d) * weight
    loss_ref = jnp.mean((G_ref - target) ** 2)
    assert jnp.allclose(out, x)
    assert jnp.allclose(G, G_ref, rtol=2e-5, atol=1e-4)
    assert jnp.allclose(loss, loss_ref, rtol=1e-4, atol=1e-3)

    # ---- Test 2: channel-heavy layer -> lower-triangle tiled path + bf16 ----
    a2, b2, c2, d2 = 1, 512, 16, 16
    weight2 = 10.0
    x2 = jax.random.normal(kx2, (a2, b2, c2, d2), dtype=jnp.float32)
    style2 = jax.random.normal(kt2, (a2, b2, c2, d2), dtype=jnp.float32)
    sf2 = style2.reshape(a2 * b2, c2 * d2)
    target2 = (sf2 @ sf2.T) / float(a2 * b2 * c2 * d2) * weight2

    out2, G2, loss2 = style_loss_forward(x2, target2, weight2,
                                         feature_dtype=jnp.bfloat16)
    jax.block_until_ready((out2, G2, loss2))

    f2 = x2.reshape(a2 * b2, c2 * d2).astype(jnp.bfloat16).astype(jnp.float32)
    G2_ref = (f2 @ f2.T) / float(a2 * b2 * c2 * d2) * weight2
    loss2_ref = jnp.mean((G2_ref - target2) ** 2)
    assert jnp.allclose(out2, x2)
    assert jnp.allclose(G2, G2_ref, rtol=1e-3, atol=1e-5)
    assert jnp.allclose(loss2, loss2_ref, rtol=1e-3, atol=1e-5)

    print("KERNEL_OK")
</pallas_src>

<mosaic_0001>
module attributes {stable_mosaic.version = 11 : i64} {
  func.func @_gram_kernel_single(%arg0: i32, %arg1: i32, %arg2: memref<8x128xf32, #tpu.memory_space<vmem>>, %arg3: memref<1x8x8xf32, #tpu.memory_space<vmem>>) attributes {dimension_semantics = [#tpu.dimension_semantics<parallel>, #tpu.dimension_semantics<arbitrary>], iteration_bounds = array<i64: 1, 2>, scalar_prefetch = 0 : i64, scratch_operands = 0 : i64, tpu.core_type = #tpu.core_type<tc>, window_params = [{transform_indices = @transform_0, window_bounds = array<i64: 8, 128>}, {transform_indices = @transform_1, window_bounds = array<i64: 1, 8, 8>}]} {
    %c0_i32 = arith.constant 0 : i32
    %0 = arith.cmpi eq, %arg1, %c0_i32 : i32
    %1 = arith.extui %0 : i1 to i32
    %c0_i32_0 = arith.constant 0 : i32
    %2 = arith.cmpi ne, %1, %c0_i32_0 : i32
    scf.if %2 {
      %cst_8 = arith.constant 0.000000e+00 : f32
      %11 = vector.broadcast %cst_8 : f32 to vector<8x8xf32>
      %c0_9 = arith.constant 0 : index
      %c0_10 = arith.constant 0 : index
      %c0_11 = arith.constant 0 : index
      %12 = vector.load %arg3[%c0_9, %c0_10, %c0_11] : memref<1x8x8xf32, #tpu.memory_space<vmem>>, vector<1x8x8xf32>
      %13 = vector.shape_cast %12 : vector<1x8x8xf32> to vector<8x8xf32>
      %14 = vector.shape_cast %11 : vector<8x8xf32> to vector<1x8x8xf32>
      tpu.vector_store %arg3[%c0_9, %c0_10, %c0_11], %14 {strides = array<i32>} : memref<1x8x8xf32, #tpu.memory_space<vmem>>, vector<1x8x8xf32>,
    } else {
    }
    %c0 = arith.constant 0 : index
    %c0_1 = arith.constant 0 : index
    %3 = vector.load %arg2[%c0, %c0_1] : memref<8x128xf32, #tpu.memory_space<vmem>>, vector<8x128xf32>
    %c0_2 = arith.constant 0 : index
    %c0_3 = arith.constant 0 : index
    %c0_4 = arith.constant 0 : index
    %4 = vector.load %arg3[%c0_2, %c0_3, %c0_4] : memref<1x8x8xf32, #tpu.memory_space<vmem>>, vector<1x8x8xf32>
    %5 = vector.shape_cast %4 : vector<1x8x8xf32> to vector<8x8xf32>
    %cst = arith.constant dense<0.000000e+00> : vector<8x8xf32>
    %6 = tpu.matmul %3, %3, %cst {dimension_numbers = #tpu.dot_dimension_numbers<[1], [1], [0], [0], [0, 0, 1, 0], [], []>} : vector<8x128xf32>, vector<8x128xf32>, vector<8x8xf32> -> vector<8x8xf32>
    %7 = arith.addf %5, %6 : vector<8x8xf32>
    %c0_5 = arith.constant 0 : index
    %c0_6 = arith.constant 0 : index
    %c0_7 = arith.constant 0 : index
    %8 = vector.load %arg3[%c0_5, %c0_6, %c0_7] : memref<1x8x8xf32, #tpu.memory_space<vmem>>, vector<1x8x8xf32>
    %9 = vector.shape_cast %8 : vector<1x8x8xf32> to vector<8x8xf32>
    %10 = vector.shape_cast %7 : vector<8x8xf32> to vector<1x8x8xf32>
    tpu.vector_store %arg3[%c0_5, %c0_6, %c0_7], %10 {strides = array<i32>} : memref<1x8x8xf32, #tpu.memory_space<vmem>>, vector<1x8x8xf32>,
    return
  }
  func.func @transform_0(%arg0: i32, %arg1: i32) -> (i32, i32) {
    %c2_i32 = arith.constant 2 : i32
    %0 = arith.muli %arg0, %c2_i32 : i32
    %1 = arith.addi %0, %arg1 : i32
    %c0_i32 = arith.constant 0 : i32
    %c0_i32_0 = arith.constant 0 : i32
    return %c0_i32, %1 : i32, i32
  }
  func.func @transform_1(%arg0: i32, %arg1: i32) -> (i32, i32, i32) {
    %c0_i32 = arith.constant 0 : i32
    %c0_i32_0 = arith.constant 0 : i32
    %c0_i32_1 = arith.constant 0 : i32
    return %arg0, %c0_i32, %c0_i32_0 : i32, i32, i32
  }
}

</mosaic_0001>

<bundles_post_ra>
// kernel: tpu_custom_call.1
= control target key start
LH: loop header
LB: loop body
LE: loop exit
PB: predicated region body
PF: predicated region fallthrough
CT: control target
= control target key end

     0   :  { %6 = vsyncpa [#allocation3], 0  ;;  %s544_s0 = inlined_call_operand.hbm [shape: f32[8,256], index: 0, kind: input, shape index: {}]   ;;  %s545_s1 = inlined_call_operand.hbm [shape: f32[1,8,8], index: 1, kind: output, shape index: {}]  }
   0x1   :  { %8 = vsyncpa [#allocation3 + $0x1], 0 }
   0x2   :  { %9 = vsyncpa [#allocation4], 0  ;;  %s453_s6 = smov 0   ;;  %s455_s7 = smov 0  }
   0x3   :  { %s457_s8 = smov 0   ;;  %s459_s9 = smov 0  }
   0x4   :  { %s461_s10 = smov 0   ;;  %s463_s11 = smov 0  }
   0x5 LB: > { %s252_s12 = sadd.s32 4294967295, %s439_s11   ;;  %s24_s13 = sadd.s32 1, %s435_s10  ;;  %s439_s11 = sphi %s463_s11, %s15_s11   ;;  %s435_s10 = sphi %s461_s10, %s552_s10   ;;  %s431_s9 = sphi %s459_s9, %s551_s9   ;;  %s427_s8 = sphi %s457_s8, %s550_s8   ;;  %s423_s7 = sphi %s455_s7, %s549_s7   ;;  %s419_s6 = sphi %s453_s6, %s548_s6  }
   0x6   : > { %p25_p0 = scmp.ge.s32.totalorder %s24_s13, 2  ;;  %s38_s14 = sadd.s32 1, %s427_s8 }
   0x7   : > { %p45_p1 = scmp.ne.s32.totalorder %s427_s8, %s423_s7  ;;  %p46_p2 = scmp.eq.s32.totalorder %s439_s11, 0 }
   0x8   : > { %s554_s13 = smov (%p25_p0, %s24_s13), 0  ;;  %p51_p4 = scmp.ne.s32.totalorder %s423_s7, %s419_s6 }
   0x9   : > { %p489_p3 = por %p46_p2, %p45_p1  ;;  %s35_s16 = ssub.s32 %s435_s10, %s554_s13 }
   0xa   : > { %p52_p5 = scmp.eq.s32.totalorder %s252_s12, 0  ;;  %p36_p6 = scmp.eq.s32.totalorder %s35_s16, 0 }
   0xb   : > { %p274_p8 = scmp.lt.s32.totalorder %s439_s11, 2  ;;  %s101_s19 = sand.u32 1, %s427_s8  }
   0xc   : > { %p498_p7 = por %p52_p5, %p51_p4  ;;  %s256_s20 = sshll.u32 %s435_s10, 3 }
   0xd   : > { %s504_s18 = scalar_select %p36_p6, %s427_s8, %s38_s14  }
   0xe   : > { %s255_s21 = sshll.u32 %s101_s19, 3  ;;  %s111_s24 = scalar_lea.hbm %s544_s0, %s256_s20 }
   0xf   : > { %s113_s25 = sshll.u32 %s111_s24, 4  ;;  %s105_s26 = scalar_lea.vmem [#allocation2], %s255_s21  ;;  %s114_s25 = int_to_ptr.hbm [resolvable:$true] %s113_s25 }
  0x10   : > { %s115_s27 = sshll.u32 %s105_s26, 4  ;;  %p271_p9 = pnand %p274_p8, %p489_p3  ;;  %s116_s27 = int_to_ptr.vmem [resolvable:$true] %s115_s27 }
  0x11   : > { %p257_p10 = scmp.ge.s32.totalorder %s439_s11, 1  ;;  %p120_p11 = scmp.lt.s32.totalorder %s439_s11, 3 }
  0x12   : > { %s102_s28 = scalar_lea.sflag [#allocation3], %s101_s19 }
  0x13   : > { %273 = dma.hbm_to_vmem [thread:$0]  (!%p271_p9), %s114_s25, 128, %s116_s27, %s102_s28  }
  0x14   : > { %p121_p12 = pnand %p257_p10, %p120_p11 }
  0x15   : > { %s126_s29 = sand.u32 (!%p121_p12), 1, %s423_s7  }
  0x16   : > { %124 = sbr.rel (%p121_p12) target bundleno = 173 (0xad), region = 24  ;;  %s258_s30 = sshll.u32 (!%p121_p12), %s126_s29, 3 }
  0x17   : > { %s127_s2 = scalar_lea.sflag (!%p121_p12), [#allocation3], %s126_s29  ;;  %s130_s3 = scalar_lea.vmem (!%p121_p12), [#allocation2], %s258_s30 }
  0x1b   : > { %410 = dma.done.wait (%p498_p7), %s127_s2, 128  }
  0x1c   : > { %412 = vsyncadd (%p498_p7), %s127_s2, 4294967168  ;;  %p259_p13 = scmp.ne.s32.totalorder %s431_s9, 0 }
  0x1e   : > { %150 = sbr.rel (%p259_p13) target bundleno = 37 (0x25), region = 32 }
  0x23   : > { %vm151_vm0 = vcmask 64512   ;;  %v441_v0 = vmov 0.0  }
  0x24   : > { %152 = vst.msk [vmem:[#allocation5] sm:$0xff] %vm151_vm0, %v441_v0 }
  0x25 PF: > { %v153_v1 = vld [vmem:[%s130_s3] sm:$0xff]  ;;  %s442_s4 = smov [#allocation5]   ;;  %s188_s15 = sshll.u32 %s545_s1, 4  ;;  %vm176_vm1 = vcmask 64512   ;;  %s189_s15 = int_to_ptr.hbm [resolvable:$true] %s188_s15 }
  0x26   : > { %170 = vmatpush.xpose.msra.mxu0 %v153_v1  ;;  %s186_s5 = sshll.u32 %s442_s4, 4  ;;  %p275_p0 = scmp.eq.s32.totalorder %s252_s12, 1  ;;  %s187_s5 = int_to_ptr.vmem [resolvable:$true] %s186_s5 }
  0x29   : > { %171 = vmatmul.f32.vlgmr.msra.gmra.mxu0 %v153_v1 }
  0x2b   : > { %v154_v2 = vld [vmem:[#allocation5] sm:$0xff] }
  0xa6   : > { %v172_v3 = vpop.f32.mrf.mxu0 }
  0xa7   : > { %v175_v4 = vadd.f32 %v172_v3, %v154_v2 }
  0xa9   : > { %177 = vst.msk [vmem:[#allocation5] sm:$0xff] %vm176_vm1, %v175_v4 }
  0xaa   : > { %267 = dma.vmem_to_hbm [thread:$0]  (%p275_p0), %s187_s5, 128, %s189_s15, [#allocation4]  }
  0xab   : > { %414 = dma.done.wait (%p275_p0), [#allocation4], 128  }
  0xac   : > { %416 = vsyncadd (%p275_p0), [#allocation4], 4294967168 }
  0xad PF: > { %s15_s11 = sadd.s32 1, %s439_s11   ;;  %s548_s6 = smov %s423_s7 }
  0xae   : > { %p12_p1 = scmp.ge.s32.totalorder %s15_s11, 4   ;;  %s549_s7 = smov %s427_s8 }
  0xaf   : > { %s550_s8 = smov %s504_s18  ;;  %s551_s9 = smov %s435_s10 }
  0xb0   : > { %s552_s10 = smov %s554_s13  ;;  %14 = sbr.rel (!%p12_p1) target bundleno = 5 (0x5), region = 66 }
  0xb5   :  { %202 = vsyncpa [#allocation3], 1 }
  0xb6   :  { %204 = vsyncpa [#allocation3 + $0x1], 1 }
  0xb7   :  { %205 = vsyncpa [#allocation4], 1 }
  0xb8   :  { %207 = vsyncpa [#allocation4 + $0x1], 1 }

</bundles_post_ra>
